<compile_context>
chip_gen: v5e
topology: v5e:2x2
jax: 0.10.0
libtpu: 0.0.40
codegen_flags: <defaults>
</compile_context>

<pallas_src>
import jax
import jax.numpy as jnp
from jax.experimental import pallas as pl
from jax.experimental.pallas import tpu as pltpu


def rec_attention_kernel(x_ref, ctx_ref, repres_ref, alpha_ref):
    # x_ref:      (TB, S, R)  batch tile of iput
    # ctx_ref:    (1, R)      bin_context_vector, lane-dense, grid-resident
    # repres_ref: (TB, R)     attention-pooled representation (lane-dense)
    # alpha_ref:  (TB, S)     attention weights (lane-dense)
    x = x_ref[...]                                       # (TB, S, R) f32
    ctx = ctx_ref[0]                                     # (R,)

    # scores[b, s] = sum_r x[b, s, r] * ctx[r]
    # VPU multiply + XLU lane reduce; keeps a dense (TB, S) vreg layout and
    # avoids a width-1 MXU matmul.
    scores = jnp.sum(x * ctx[None, None, :], axis=-1)    # (TB, S)

    # softmax over the source_length axis (PyTorch nn.Softmax(dim=1)).
    # Padded batch rows (all-zero) produce a uniform softmax -- harmless,
    # they are sliced away in the wrapper.
    m = jnp.max(scores, axis=-1, keepdims=True)          # (TB, 1)
    e = jnp.exp(scores - m)                              # (TB, S)  EUP
    denom = jnp.sum(e, axis=-1, keepdims=True)           # (TB, 1)
    alpha = e * pl.reciprocal(denom, approx=True)        # (TB, S)  EUP recip
    alpha_ref[...] = alpha

    # repres[b, r] = sum_s alpha[b, s] * x[b, s, r]  (the torch.bmm hot path):
    # broadcast-multiply + sublane reduction, all on the VPU.
    repres_ref[...] = jnp.sum(alpha[:, :, None] * x, axis=1)   # (TB, R)


def _pick_batch_tile(B, S, R, budget_bytes=8 << 20):
    """Largest batch tile whose double-buffered blocks fit a conservative VMEM
    budget (safe under the 16 MiB v5e / 32 MiB v6e/v7x scoped defaults)."""
    per_row = 4 * (S * R + S + R)                 # f32: x row + alpha row + repres row
    tb = max(1, budget_bytes // (2 * per_row))    # x2 for double buffering
    if tb >= B:
        tb = B
        # Prefer >= 2 grid steps so v7x's two TensorCores both get work.
        if B >= 16:
            half = ((B + 1) // 2 + 7) // 8 * 8
            if half < B:
                tb = half
        return tb
    # When tiling the batch axis, keep the sublane dim of the 2-D output
    # blocks 8-aligned (the (8, 128) layout rule).
    return max(8, (tb // 8) * 8)


def rec_attention_forward(iput, bin_context_vector):
    """iput: (B, S, R), bin_context_vector: (R, 1)
    -> (repres (B, 1, R), alpha (B, S)) matching the PyTorch forward."""
    B, S, R = iput.shape
    iput = iput.astype(jnp.float32)
    ctx = bin_context_vector.astype(jnp.float32).reshape(1, R)   # lane-dense

    tb = _pick_batch_tile(B, S, R)
    Bp = pl.cdiv(B, tb) * tb
    x = iput if Bp == B else jnp.pad(iput, ((0, Bp - B), (0, 0), (0, 0)))

    repres2d, alpha = pl.pallas_call(
        rec_attention_kernel,
        out_shape=(
            jax.ShapeDtypeStruct((Bp, R), jnp.float32),
            jax.ShapeDtypeStruct((Bp, S), jnp.float32),
        ),
        grid_spec=pltpu.PrefetchScalarGridSpec(
            num_scalar_prefetch=0,
            grid=(Bp // tb,),
            in_specs=[
                pl.BlockSpec((tb, S, R), lambda i: (i, 0, 0)),   # batch tile of iput
                pl.BlockSpec((1, R), lambda i: (0, 0)),          # resident context vec
            ],
            out_specs=[
                pl.BlockSpec((tb, R), lambda i: (i, 0)),         # repres, lane-dense
                pl.BlockSpec((tb, S), lambda i: (i, 0)),         # alpha, lane-dense
            ],
        ),
        compiler_params=pltpu.CompilerParams(
            dimension_semantics=("parallel",)),
    )(x, ctx)

    repres = repres2d[:B].reshape(B, 1, R)   # metadata-only reshape
    alpha = alpha[:B]
    return repres, alpha


def rec_attention_ref(iput, ctx):
    # pure-JAX reference of the PyTorch forward, for self-validation
    scores = jnp.einsum("bsr,rk->bsk", iput, ctx)[..., 0]          # (B, S)
    alpha = jax.nn.softmax(scores, axis=1)                         # (B, S)
    repres = jnp.einsum("bqs,bsr->bqr", alpha[:, None, :], iput)   # (B, 1, R)
    return repres, alpha


if __name__ == "__main__":
    key = jax.random.PRNGKey(0)
    k_in, k_ctx = jax.random.split(key)

    # hm=True  => bin_rep_size = args.bin_rnn_size
    B, S, R = 2, 8, 32  # batch, source_length, bin_rnn_size
    iput = jax.random.normal(k_in, (B, S, R), dtype=jnp.float32)
    # nn.Parameter(Tensor(R, 1)).uniform_(-0.1, 0.1)
    bin_context_vector = jax.random.uniform(
        k_ctx, (R, 1), dtype=jnp.float32, minval=-0.1, maxval=0.1)

    repres, alpha = rec_attention_forward(iput, bin_context_vector)
    jax.block_until_ready((repres, alpha))

    r_ref, a_ref = rec_attention_ref(iput, bin_context_vector)
    assert repres.shape == (B, 1, R) and alpha.shape == (B, S)
    # tolerance relaxed slightly for the EUP approx-reciprocal in the softmax
    assert jnp.allclose(repres, r_ref, atol=2e-3, rtol=2e-3)
    assert jnp.allclose(alpha, a_ref, atol=2e-3, rtol=2e-3)

    print("KERNEL_OK")
</pallas_src>

<mosaic_0001>
module attributes {stable_mosaic.version = 11 : i64} {
  func.func @rec_attention_kernel(%arg0: i32, %arg1: memref<2x8x32xf32, #tpu.memory_space<vmem>>, %arg2: memref<1x32xf32, #tpu.memory_space<vmem>>, %arg3: memref<2x32xf32, #tpu.memory_space<vmem>>, %arg4: memref<2x8xf32, #tpu.memory_space<vmem>>) attributes {dimension_semantics = [#tpu.dimension_semantics<parallel>], iteration_bounds = array<i64: 1>, scalar_prefetch = 0 : i64, scratch_operands = 0 : i64, tpu.core_type = #tpu.core_type<tc>, window_params = [{transform_indices = @transform_0, window_bounds = array<i64: 2, 8, 32>}, {pipeline_mode = #tpu.pipeline_mode<synchronous>, transform_indices = @transform_1, window_bounds = array<i64: 1, 32>}, {transform_indices = @transform_2, window_bounds = array<i64: 2, 32>}, {transform_indices = @transform_3, window_bounds = array<i64: 2, 8>}]} {
    %c0 = arith.constant 0 : index
    %c0_0 = arith.constant 0 : index
    %c0_1 = arith.constant 0 : index
    %0 = vector.load %arg1[%c0, %c0_0, %c0_1] : memref<2x8x32xf32, #tpu.memory_space<vmem>>, vector<2x8x32xf32>
    %c0_2 = arith.constant 0 : index
    %c0_3 = arith.constant 0 : index
    %1 = vector.load %arg2[%c0_2, %c0_3] : memref<1x32xf32, #tpu.memory_space<vmem>>, vector<1x32xf32>
    %2 = vector.shape_cast %1 : vector<1x32xf32> to vector<32xf32>
    %3 = vector.shape_cast %2 : vector<32xf32> to vector<1x1x32xf32>
    %4 = vector.broadcast %3 : vector<1x1x32xf32> to vector<2x8x32xf32>
    %5 = arith.mulf %0, %4 : vector<2x8x32xf32>
    %cst = arith.constant dense<0.000000e+00> : vector<2x8xf32>
    %6 = vector.multi_reduction <add>, %5, %cst [2] : vector<2x8x32xf32> to vector<2x8xf32>
    %cst_4 = arith.constant dense<0xFF800000> : vector<2xf32>
    %7 = vector.multi_reduction <maximumf>, %6, %cst_4 [1] : vector<2x8xf32> to vector<2xf32>
    %8 = vector.shape_cast %7 : vector<2xf32> to vector<2x1xf32>
    %9 = vector.broadcast %8 : vector<2x1xf32> to vector<2x8xf32>
    %10 = arith.subf %6, %9 : vector<2x8xf32>
    %11 = math.exp %10 : vector<2x8xf32>
    %cst_5 = arith.constant dense<0.000000e+00> : vector<2xf32>
    %12 = vector.multi_reduction <add>, %11, %cst_5 [1] : vector<2x8xf32> to vector<2xf32>
    %13 = vector.shape_cast %12 : vector<2xf32> to vector<2x1xf32>
    %14 = tpu.reciprocal %13 {approx = true} : vector<2x1xf32> -> vector<2x1xf32>
    %15 = vector.broadcast %14 : vector<2x1xf32> to vector<2x8xf32>
    %16 = arith.mulf %11, %15 : vector<2x8xf32>
    %c0_6 = arith.constant 0 : index
    %c0_7 = arith.constant 0 : index
    %17 = vector.load %arg4[%c0_6, %c0_7] : memref<2x8xf32, #tpu.memory_space<vmem>>, vector<2x8xf32>
    tpu.vector_store %arg4[%c0_6, %c0_7], %16 {strides = array<i32>} : memref<2x8xf32, #tpu.memory_space<vmem>>, vector<2x8xf32>,
    %18 = vector.shape_cast %16 : vector<2x8xf32> to vector<2x8x1xf32>
    %19 = vector.broadcast %18 : vector<2x8x1xf32> to vector<2x8x32xf32>
    %20 = arith.mulf %19, %0 : vector<2x8x32xf32>
    %cst_8 = arith.constant dense<0.000000e+00> : vector<2x32xf32>
    %21 = vector.multi_reduction <add>, %20, %cst_8 [1] : vector<2x8x32xf32> to vector<2x32xf32>
    %c0_9 = arith.constant 0 : index
    %c0_10 = arith.constant 0 : index
    %22 = vector.load %arg3[%c0_9, %c0_10] : memref<2x32xf32, #tpu.memory_space<vmem>>, vector<2x32xf32>
    tpu.vector_store %arg3[%c0_9, %c0_10], %21 {strides = array<i32>} : memref<2x32xf32, #tpu.memory_space<vmem>>, vector<2x32xf32>,
    return
  }
  func.func @transform_0(%arg0: i32) -> (i32, i32, i32) {
    %c0_i32 = arith.constant 0 : i32
    %c0_i32_0 = arith.constant 0 : i32
    %c0_i32_1 = arith.constant 0 : i32
    return %arg0, %c0_i32, %c0_i32_0 : i32, i32, i32
  }
  func.func @transform_1(%arg0: i32) -> (i32, i32) {
    %c0_i32 = arith.constant 0 : i32
    %c0_i32_0 = arith.constant 0 : i32
    %c0_i32_1 = arith.constant 0 : i32
    return %c0_i32, %c0_i32_0 : i32, i32
  }
  func.func @transform_2(%arg0: i32) -> (i32, i32) {
    %c0_i32 = arith.constant 0 : i32
    %c0_i32_0 = arith.constant 0 : i32
    return %arg0, %c0_i32 : i32, i32
  }
  func.func @transform_3(%arg0: i32) -> (i32, i32) {
    %c0_i32 = arith.constant 0 : i32
    %c0_i32_0 = arith.constant 0 : i32
    return %arg0, %c0_i32 : i32, i32
  }
}

</mosaic_0001>

<bundles_post_ra>
// kernel: tpu_custom_call.1
= control target key start
LH: loop header
LB: loop body
LE: loop exit
PB: predicated region body
PF: predicated region fallthrough
CT: control target
= control target key end

     0   :  { %9 = vsyncpa [#allocation3], 0  ;;  %s349_s0 = inlined_call_operand.hbm [shape: f32[2,8,32], index: 0, kind: input, shape index: {}]   ;;  %s350_s1 = inlined_call_operand.hbm [shape: f32[1,32], index: 1, kind: input, shape index: {}]   ;;  %s351_s2 = inlined_call_operand.hbm [shape: f32[2,32], index: 2, kind: output, shape index: {0}]   ;;  %s352_s3 = inlined_call_operand.hbm [shape: f32[2,8], index: 3, kind: output, shape index: {1}]  }
   0x1   :  { %10 = vsyncpa [#allocation6], 0 }
   0x2   :  { %11 = vsyncpa [#allocation4], 0 }
   0x3   :  { %12 = vsyncpa [#allocation9], 0  ;;  %s17_s14 = sshll.u32 %s349_s0, 4  ;;  %s299_s15 = smov [#allocation2]   ;;  %s18_s14 = int_to_ptr.hbm [resolvable:$true] %s17_s14 }
   0x4   :  { %s19_s16 = sshll.u32 %s299_s15, 4  ;;  %s31_s19 = sshll.u32 %s350_s1, 4  ;;  %s20_s16 = int_to_ptr.vmem [resolvable:$true] %s19_s16  ;;  %s32_s19 = int_to_ptr.hbm [resolvable:$true] %s31_s19 }
   0x5   :  { %s300_s20 = smov 128   ;;  %s301_s21 = smov 8  }
   0x6   :  { %25 = dma.hbm_to_vmem [thread:$0]  %s18_s14, 256, %s20_s16, [#allocation3], %s300_s20, %s300_s20, %s301_s21  }
   0x7   :  { %s302_s22 = smov [#allocation5]  }
   0x8   :  { %s33_s23 = sshll.u32 %s302_s22, 4  ;;  %s34_s23 = int_to_ptr.vmem [resolvable:$true] %s33_s23 }
   0x9   :  { %36 = dma.hbm_to_vmem [thread:$0]  %s32_s19, 16, %s34_s23, [#allocation6]  }
   0xa   :  { %291 = dma.done.wait [#allocation3], 256  }
   0xb   :  { %292 = vsyncadd [#allocation3], 4294967040 }
   0xc   :  { %293 = dma.done.wait [#allocation6], 16  }
   0xd   :  { %294 = vsyncadd [#allocation6], 4294967280  ;;  %v45_v0 = vld [vmem:[#allocation2] sm:$0xff]  ;;  %v188_v1 = vld [vmem:[#allocation5] ss:$0 sm:$0xff]  ;;  %vm53_vm0 = vcmask 261120   ;;  %v62_v8 = vlaneseq }
   0xe   :  { %v51_v2 = vmul.f32 %v188_v1, %v45_v0  ;;  %v46_v3 = vld [vmem:[#allocation2 + $0x8] sm:$0xff]  ;;  %vm66_vm1 = vcmask 1041409   ;;  %vm69_vm2 = vcmask 58368   ;;  %v303_v15 = vmov 0   ;;  %s304_s0 = smov [#allocation8]   ;;  %s162_s26 = sshll.u32 %s352_s3, 4  ;;  %s163_s26 = int_to_ptr.hbm [resolvable:$true] %s162_s26 }
   0xf   :  { %v52_v5 = vmul.f32 %v188_v1, %v46_v3  ;;  %v63_v9 = vand.u32 127, %v62_v8  ;;  %186 = vset.pattern.permute.xlu2 %v303_v15  ;;  %185 = vset.pattern.permute.xlu1 %v303_v15  ;;  %s160_s1 = sshll.u32 %s304_s0, 4  ;;  %s305_s3 = smov [#allocation7]   ;;  %vm142_vm3 = vcmask 254976   ;;  %s161_s1 = int_to_ptr.vmem [resolvable:$true] %s160_s1 }
  0x10   :  { %v54_v4 = vsel %vm53_vm0, %v51_v2, 0.0  ;;  %187 = vset.pattern.permute.xlu0 %v303_v15  ;;  %s149_s27 = sshll.u32 %s305_s3, 4  ;;  %s151_s30 = sshll.u32 %s351_s2, 4  ;;  %s150_s27 = int_to_ptr.vmem [resolvable:$true] %s149_s27  ;;  %s152_s30 = int_to_ptr.hbm [resolvable:$true] %s151_s30 }
  0x11   :  { %55 = vadd.xlane.f32.xlu0 %v54_v4  ;;  %v57_v6 = vsel %vm53_vm0, %v52_v5, 0.0 }
  0x19   :  { %58 = vadd.xlane.f32.xlu0 %v57_v6 }
  0x84   :  { %v56_v7 = vpop.xlane.xlu0 %55 }
  0x85   :  { %v64_v11 = vperm.slane %v56_v7, %v63_v9 }
  0x8c   :  { %v59_v10 = vpop.xlane.xlu0 %58 }
  0x8d   :  { %v65_v12 = vperm.slane %v59_v10, %v63_v9 }
  0x8f   :  { %v67_v13 = vsel %vm66_vm1, %v65_v12, %v64_v11 }
  0x90   :  { %v70_v14 = vsel %vm69_vm2, %v67_v13, -inf }
  0x91   :  { %71 = vmax.xlane.f32.xlu1 %v70_v14 }
 0x104   :  { %v72_v16 = vpop.xlane.xlu1 %71 }
 0x105   :  { %v74_v17 = vperm.slane %v72_v16, 0  ;;  %v75_v18 = vperm.slane %v72_v16, 1 }
 0x107   :  { %v78_v19 = vsub.f32 %v56_v7, %v74_v17  ;;  %v79_v20 = vsub.f32 %v59_v10, %v75_v18 }
 0x109   :  { %v80_v21 = vmul.f32 1.442695, %v78_v19  ;;  %v82_v22 = vmul.f32 1.442695, %v79_v20 }
 0x10b   :  { %189 = vpow2.f32 %v80_v21 }
 0x10c   :  { %191 = vpow2.f32 %v82_v22 }
 0x111   :  { %v190_v23 = vpop.eup %189 }
 0x112   :  { %v192_v24 = vpop.eup %191  ;;  %87 = vperm.xlu1 %185, %v190_v23  }
 0x113   :  { %90 = vperm.xlu2 %186, %v192_v24  }
 0x16d   :  { %v91_v25 = vpop.permute.xlu2 %90 }
 0x16e   :  { %v93_v27 = vperm.slane %v91_v25, %v63_v9 }
 0x184   :  { %v88_v26 = vpop.permute.xlu1 %87 }
 0x185   :  { %v92_v28 = vperm.slane %v88_v26, %v63_v9 }
 0x187   :  { %v94_v29 = vsel %vm66_vm1, %v93_v27, %v92_v28 }
 0x188   :  { %v96_v30 = vsel %vm69_vm2, %v94_v29, 0.0 }
 0x189   :  { %97 = vadd.xlane.f32.xlu2 %v96_v30 }
 0x1fc   :  { %v98_v31 = vpop.xlane.xlu2 %97 }
 0x1fd   :  { %193 = vrcp.f32 %v98_v31 }
 0x203   :  { %v194_v32 = vpop.eup %193 }
 0x204   :  { %v102_v33 = vperm.slane %v194_v32, 1  ;;  %v101_v34 = vperm.slane %v194_v32, 0 }
 0x206   :  { %v106_v35 = vmul.f32 %v192_v24, %v102_v33  ;;  %v105_v36 = vmul.f32 %v190_v23, %v101_v34 }
 0x208   :  { %113 = vperm.xlu1 %185, %v106_v35   ;;  %110 = vperm.xlu0 %187, %v105_v36  }
 0x27a   :  { %v114_v37 = vpop.permute.xlu1 %113  ;;  %v111_v38 = vpop.permute.xlu0 %110 }
 0x27b   :  { %v116_v39 = vperm.slane %v114_v37, %v63_v9  ;;  %v123_v40 = vmul.f32 %v114_v37, %v46_v3  ;;  %v115_v41 = vperm.slane %v111_v38, %v63_v9  ;;  %v122_v42 = vmul.f32 %v111_v38, %v45_v0 }
 0x27d   :  { %v131_v43 = vsel %vm53_vm0, %v123_v40, 0.0  ;;  %v117_v44 = vsel %vm66_vm1, %v116_v39, %v115_v41  ;;  %v124_v45 = vsel %vm53_vm0, %v122_v42, 0.0 }
 0x27e   :  { %v132_v46 = vrot.slane %v131_v43, 4  ;;  %v125_v47 = vrot.slane %v124_v45, 4  ;;  %119 = vst.msk [vmem:[#allocation8] sm:$0x3] %vm69_vm2, %v117_v44 }
 0x27f   :  { %165 = dma.vmem_to_hbm [thread:$0]  %s161_s1, 32, %s163_s26, [#allocation9]  }
 0x280   :  { %v133_v48 = vadd.f32 %v132_v46, %v131_v43  ;;  %v126_v49 = vadd.f32 %v125_v47, %v124_v45 }
 0x282   :  { %v134_v50 = vrot.slane %v133_v48, 2  ;;  %v127_v51 = vrot.slane %v126_v49, 2 }
 0x284   :  { %v135_v52 = vadd.f32 %v134_v50, %v133_v48  ;;  %v128_v53 = vadd.f32 %v127_v51, %v126_v49 }
 0x286   :  { %v136_v54 = vrot.slane %v135_v52, 1  ;;  %v129_v55 = vrot.slane %v128_v53, 1 }
 0x288   :  { %v137_v56 = vadd.f32 %v136_v54, %v135_v52  ;;  %v130_v57 = vadd.f32 %v129_v55, %v128_v53 }
 0x28a   :  { %v140_v58 = vsel %vm66_vm1, %v137_v56, %v130_v57 }
 0x28b   :  { %143 = vst.msk [vmem:[#allocation7] sm:$0x3] %vm142_vm3, %v140_v58 }
 0x28c   :  { %154 = dma.vmem_to_hbm [thread:$0]  %s150_s27, 32, %s152_s30, [#allocation4]  }
 0x28d   :  { %295 = dma.done.wait [#allocation4], 32  }
 0x28e   :  { %296 = vsyncadd [#allocation4], 4294967264 }
 0x28f   :  { %297 = dma.done.wait [#allocation9], 32  }
 0x290   :  { %298 = vsyncadd [#allocation9], 4294967264 }
 0x291   :  { %174 = vsyncpa [#allocation3], 1 }
 0x292   :  { %175 = vsyncpa [#allocation6], 1 }
 0x293   :  { %176 = vsyncpa [#allocation4], 1 }
 0x294   :  { %177 = vsyncpa [#allocation9], 1 }

</bundles_post_ra>
